<compile_context>
chip_gen: v7x
topology: tpu7x:2x2x1
jax: 0.10.0
libtpu: 0.0.40
codegen_flags: <defaults>
</compile_context>

<pallas_src>
import functools

import jax
import jax.numpy as jnp
from jax.experimental import pallas as pl
from jax.experimental.pallas import tpu as pltpu


def _round_up(v, m):
    return ((v + m - 1) // m) * m


def _lipseq_loss_kernel(len_ref, tgt_smem_ref, tgt_ref, x_hbm, out_ref,
                        buf, sem, acc_ref, *, B, T, C, BB, W, n_steps):
    # len_ref, tgt_smem_ref : (B,) int32 in SMEM (scalar prefetch).
    # tgt_ref               : (BB, 1) int32 VMEM block of targets for this step.
    # x_hbm                 : (B*T, C) log-probs, raw HBM ref (pl.ANY).
    # out_ref               : (1, 1, 1) f32 per-core partial sum.
    # buf                   : (2*BB, W) VMEM gather scratch (double buffer).
    # sem                   : (2,) DMA semaphores, one per buffer slot.
    # acc_ref               : (BB, 1) f32 per-row accumulator.
    p = pl.program_id(0)          # TensorCore split ("parallel")
    g = pl.program_id(1)          # reduction steps ("arbitrary")
    slot = g % 2

    def issue(step, slot_):
        # Start BB row-gather DMAs for block (p, step) into buffer slot `slot_`.
        base = (p * n_steps + step) * BB

        def body(i, carry):
            idx = jnp.minimum(base + i, B - 1)          # clamp padded rows in-bounds
            ln = len_ref[idx]
            t = jnp.minimum(jnp.int32(T), ln) - 1
            t = jnp.where(t < 0, t + T, t)              # length==0 -> last row (torch [-1])
            row = idx * T + t
            if C > 128:
                tgt = tgt_smem_ref[idx]
                col0 = jnp.maximum(jnp.minimum((tgt // 128) * 128, C - 128), 0)
            else:
                col0 = 0
            pltpu.make_async_copy(
                x_hbm.at[pl.ds(row, 1), pl.ds(col0, W)],
                buf.at[pl.ds(slot_ * BB + i, 1)],
                sem.at[slot_],
            ).start()
            return carry

        jax.lax.fori_loop(0, BB, body, 0)

    def wait_all(slot_):
        def body(i, carry):
            pltpu.make_async_copy(
                x_hbm.at[pl.ds(0, 1), pl.ds(0, W)],      # shape-only descriptor
                buf.at[pl.ds(slot_ * BB, 1)],
                sem.at[slot_],
            ).wait()
            return carry

        jax.lax.fori_loop(0, BB, body, 0)

    @pl.when(g == 0)
    def _init():
        acc_ref[...] = jnp.zeros_like(acc_ref)
        issue(0, 0)                                      # prime slot 0 for this core

    if n_steps > 1:
        @pl.when(g + 1 < n_steps)
        def _prefetch_next():
            issue(g + 1, 1 - slot)                       # overlap next block's DMAs

    wait_all(slot)

    start = pl.multiple_of(slot * BB, 8)
    rows = buf[pl.ds(start, BB), :].astype(jnp.float32)  # (BB, W)

    tgt_blk = tgt_ref[...]                               # (BB, 1) int32
    if C > 128:
        col0_v = jnp.maximum(jnp.minimum((tgt_blk // 128) * 128, C - 128), 0)
        off = tgt_blk - col0_v                           # target lane within window
    else:
        off = tgt_blk
    lane = jax.lax.broadcasted_iota(jnp.int32, (BB, W), 1)
    picked = jnp.where(lane == off, rows, 0.0)
    per_row = jnp.sum(picked, axis=-1, keepdims=True)    # (BB, 1) = log p[target]

    base = (p * n_steps + g) * BB
    ridx = base + jax.lax.broadcasted_iota(jnp.int32, (BB, 1), 0)
    acc_ref[...] += jnp.where(ridx < B, -per_row, 0.0)   # mask padded rows

    @pl.when(g == n_steps - 1)
    def _finalize():
        out_ref[...] = jnp.sum(acc_ref[...], axis=0, keepdims=True)[None]


def lipseq_loss(x, length, target, *, bb=32, num_par=2):
    """x: (B, T, C) float log-probs; length: (B,)/(B,1) int; target: (B,1) int."""
    B, T, C = x.shape
    length_s = jnp.reshape(length, (B,)).astype(jnp.int32)
    target_s = jnp.reshape(target, (B,)).astype(jnp.int32)
    x_rows = x.reshape(B * T, C)                         # free contiguous collapse

    W = C if C <= 128 else 128                           # gather width per row
    BB = min(bb, _round_up(pl.cdiv(B, num_par), 8))      # samples per grid step
    BB = _round_up(max(BB, 8), 8)
    n_steps = pl.cdiv(B, num_par * BB)
    B_pad = num_par * n_steps * BB

    # Targets also as a lane-1 VMEM-blocked column for the full-tile compare.
    target_2d = jnp.pad(target_s[:, None], ((0, B_pad - B), (0, 0)))

    kernel = functools.partial(_lipseq_loss_kernel,
                               B=B, T=T, C=C, BB=BB, W=W, n_steps=n_steps)

    partials = pl.pallas_call(
        kernel,
        out_shape=jax.ShapeDtypeStruct((num_par, 1, 1), jnp.float32),
        grid_spec=pltpu.PrefetchScalarGridSpec(
            num_scalar_prefetch=2,
            grid=(num_par, n_steps),
            in_specs=[
                pl.BlockSpec((BB, 1),
                             lambda p, g, len_ref, tgt_ref: (p * n_steps + g, 0)),
                pl.BlockSpec(memory_space=pl.ANY),        # x stays in HBM, manual DMA
            ],
            out_specs=pl.BlockSpec((1, 1, 1),
                                   lambda p, g, len_ref, tgt_ref: (p, 0, 0)),
            scratch_shapes=[
                pltpu.VMEM((2 * BB, W), x.dtype),         # double-buffered gather
                pltpu.SemaphoreType.DMA((2,)),            # one DMA sem per slot
                pltpu.VMEM((BB, 1), jnp.float32),         # widened accumulator
            ],
        ),
        compiler_params=pltpu.CompilerParams(
            dimension_semantics=("parallel", "arbitrary"),
        ),
    )(length_s, target_s, target_2d, x_rows)

    # mask.sum() == B (exactly one hit per sample).
    return (jnp.sum(partials) / B).astype(x.dtype)


def _reference(x, length, target):
    """Pure-JAX reference mirroring the PyTorch module."""
    B, T, C = x.shape
    tgt = jnp.reshape(target, (B,))
    loss_bt = -jnp.take_along_axis(x, tgt[:, None, None], axis=2)[..., 0]  # (B, T)
    t_sel = jnp.minimum(T, jnp.reshape(length, (B,))) - 1
    t_sel = jnp.where(t_sel < 0, t_sel + T, t_sel)
    mask = (jnp.arange(T)[None, :] == t_sel[:, None]).astype(x.dtype)
    return jnp.sum(loss_bt * mask) / jnp.sum(mask)


if __name__ == "__main__":
    key = jax.random.PRNGKey(0)

    # Case 1: small shape matching the module's typical use.
    B, T, C = 2, 8, 32
    k1, k2, k3, k4 = jax.random.split(key, 4)
    x = jax.nn.log_softmax(jax.random.normal(k1, (B, T, C), jnp.float32), axis=-1)
    length = jax.random.randint(k2, (B,), 1, T + 1, dtype=jnp.int32)
    target = jax.random.randint(k3, (B, 1), 0, C, dtype=jnp.int32)
    out = jax.block_until_ready(lipseq_loss(x, length, target))
    ref = jax.block_until_ready(_reference(x, length, target))
    assert jnp.allclose(out, ref, atol=1e-5, rtol=1e-5), (out, ref)

    # Case 2: exercises multi-step double-buffering, padding/masking of the
    # last partial block, length > T clamping, and the 128-lane window gather.
    B2, T2, C2 = 40, 5, 160
    k5, k6, k7 = jax.random.split(k4, 3)
    x2 = jax.nn.log_softmax(jax.random.normal(k5, (B2, T2, C2), jnp.float32), axis=-1)
    length2 = jax.random.randint(k6, (B2, 1), 1, T2 + 2, dtype=jnp.int32)
    target2 = jax.random.randint(k7, (B2, 1), 0, C2, dtype=jnp.int32)
    out2 = jax.block_until_ready(lipseq_loss(x2, length2, target2, bb=8))
    ref2 = jax.block_until_ready(_reference(x2, length2, target2))
    assert jnp.allclose(out2, ref2, atol=1e-5, rtol=1e-5), (out2, ref2)

    print("KERNEL_OK")
</pallas_src>

<mosaic_0001>
module attributes {stable_mosaic.version = 11 : i64} {
  func.func @_lipseq_loss_kernel(%arg0: i32, %arg1: i32, %arg2: memref<2xi32, #tpu.memory_space<smem>>, %arg3: memref<2xi32, #tpu.memory_space<smem>>, %arg4: memref<8x1xi32, #tpu.memory_space<vmem>>, %arg5: memref<16x32xf32, #tpu.memory_space<any>>, %arg6: memref<1x1x1xf32, #tpu.memory_space<vmem>>, %arg7: memref<16x32xf32, #tpu.memory_space<vmem>>, %arg8: memref<2x!tpu.dma_semaphore, #tpu.memory_space<semaphore_mem>>, %arg9: memref<8x1xf32, #tpu.memory_space<vmem>>) attributes {dimension_semantics = [#tpu.dimension_semantics<parallel>, #tpu.dimension_semantics<arbitrary>], iteration_bounds = array<i64: 2, 1>, scalar_prefetch = 2 : i64, scratch_operands = 3 : i64, tpu.core_type = #tpu.core_type<tc>, window_params = [{transform_indices = @transform_0, window_bounds = array<i64: 8, 1>}, {}, {transform_indices = @transform_2, window_bounds = array<i64: 1, 1, 1>}]} {
    %c2_i32 = arith.constant 2 : i32
    %c0_i32 = arith.constant 0 : i32
    %0 = arith.cmpi eq, %c2_i32, %c0_i32 : i32
    %c1_i32 = arith.constant 1 : i32
    %1 = arith.select %0, %c1_i32, %c2_i32 : i32
    %2 = arith.remsi %arg1, %1 : i32
    %c0_i32_0 = arith.constant 0 : i32
    %3 = arith.cmpi ne, %2, %c0_i32_0 : i32
    %c0_i32_1 = arith.constant 0 : i32
    %4 = arith.cmpi slt, %2, %c0_i32_1 : i32
    %c0_i32_2 = arith.constant 0 : i32
    %5 = arith.cmpi slt, %1, %c0_i32_2 : i32
    %6 = arith.xori %4, %5 : i1
    %7 = arith.andi %6, %3 : i1
    %8 = arith.addi %2, %1 : i32
    %9 = arith.select %7, %8, %2 : i32
    %c0_i32_3 = arith.constant 0 : i32
    %10 = arith.cmpi eq, %arg1, %c0_i32_3 : i32
    %11 = arith.extui %10 : i1 to i32
    %c0_i32_4 = arith.constant 0 : i32
    %12 = arith.cmpi ne, %11, %c0_i32_4 : i32
    scf.if %12 {
      %cst_22 = arith.constant 0.000000e+00 : f32
      %44 = vector.broadcast %cst_22 : f32 to vector<8x1xf32>
      %c0_23 = arith.constant 0 : index
      %c0_24 = arith.constant 0 : index
      %45 = vector.load %arg9[%c0_23, %c0_24] : memref<8x1xf32, #tpu.memory_space<vmem>>, vector<8x1xf32>
      tpu.vector_store %arg9[%c0_23, %c0_24], %44 {strides = array<i32>} : memref<8x1xf32, #tpu.memory_space<vmem>>, vector<8x1xf32>,
      %c1_i32_25 = arith.constant 1 : i32
      %46 = arith.muli %arg0, %c1_i32_25 : i32
      %c0_i32_26 = arith.constant 0 : i32
      %47 = arith.addi %46, %c0_i32_26 : i32
      %c8_i32_27 = arith.constant 8 : i32
      %48 = arith.muli %47, %c8_i32_27 : i32
      %c0_i32_28 = arith.constant 0 : i32
      %c8_i32_29 = arith.constant 8 : i32
      %49 = arith.addi %c0_i32_28, %c8_i32_29 : i32
      %c1_i32_30 = arith.constant 1 : i32
      scf.for %arg10 = %c0_i32_28 to %49 step %c1_i32_30  : i32 {
        %50 = arith.addi %48, %arg10 : i32
        %c1_i32_32 = arith.constant 1 : i32
        %51 = arith.minsi %50, %c1_i32_32 : i32
        %52 = arith.index_cast %51 : i32 to index
        %53 = memref.load %arg2[%52] : memref<2xi32, #tpu.memory_space<smem>>
        %c8_i32_33 = arith.constant 8 : i32
        %54 = arith.minsi %c8_i32_33, %53 : i32
        %c1_i32_34 = arith.constant 1 : i32
        %55 = arith.subi %54, %c1_i32_34 : i32
        %c0_i32_35 = arith.constant 0 : i32
        %56 = arith.cmpi slt, %55, %c0_i32_35 : i32
        %c8_i32_36 = arith.constant 8 : i32
        %57 = arith.addi %55, %c8_i32_36 : i32
        %58 = arith.select %56, %57, %55 : i32
        %c8_i32_37 = arith.constant 8 : i32
        %59 = arith.muli %51, %c8_i32_37 : i32
        %60 = arith.addi %59, %58 : i32
        %c0_i32_38 = arith.constant 0 : i32
        %61 = arith.addi %c0_i32_38, %arg10 : i32
        %c0_i32_39 = arith.constant 0 : i32
        %c0_i32_40 = arith.constant 0 : i32
        %62 = tpu.memref_slice %arg5[%60, %c0_i32_40] : memref<16x32xf32, #tpu.memory_space<any>> -> memref<1x32xf32, #tpu.memory_space<any>>
        %c0_i32_41 = arith.constant 0 : i32
        %63 = tpu.memref_slice %arg7[%61, %c0_i32_41] : memref<16x32xf32, #tpu.memory_space<vmem>> -> memref<1x32xf32, #tpu.memory_space<vmem>>
        %64 = tpu.memref_slice %arg8[%c0_i32_39] : memref<2x!tpu.dma_semaphore, #tpu.memory_space<semaphore_mem>> -> memref<1x!tpu.dma_semaphore, #tpu.memory_space<semaphore_mem>>
        %65 = tpu.memref_squeeze %64 : memref<1x!tpu.dma_semaphore, #tpu.memory_space<semaphore_mem>> -> memref<!tpu.dma_semaphore, #tpu.memory_space<semaphore_mem>>
        tpu.enqueue_dma source(%62 : memref<1x32xf32, #tpu.memory_space<any>>) target(%63 : memref<1x32xf32, #tpu.memory_space<vmem>>) target_semaphore(%65 : memref<!tpu.dma_semaphore, #tpu.memory_space<semaphore_mem>>)
      }
      %c8_i32_31 = arith.constant 8 : i32
    } else {
    }
    %c0_i32_5 = arith.constant 0 : i32
    %c8_i32 = arith.constant 8 : i32
    %13 = arith.addi %c0_i32_5, %c8_i32 : i32
    %c1_i32_6 = arith.constant 1 : i32
    scf.for %arg10 = %c0_i32_5 to %13 step %c1_i32_6  : i32 {
      %c8_i32_22 = arith.constant 8 : i32
      %44 = arith.muli %9, %c8_i32_22 : i32
      %c0_i32_23 = arith.constant 0 : i32
      %c0_i32_24 = arith.constant 0 : i32
      %45 = tpu.memref_slice %arg5[%c0_i32_23, %c0_i32_24] : memref<16x32xf32, #tpu.memory_space<any>> -> memref<1x32xf32, #tpu.memory_space<any>>
      %c0_i32_25 = arith.constant 0 : i32
      %46 = tpu.memref_slice %arg7[%44, %c0_i32_25] : memref<16x32xf32, #tpu.memory_space<vmem>> -> memref<1x32xf32, #tpu.memory_space<vmem>>
      %47 = tpu.memref_slice %arg8[%9] : memref<2x!tpu.dma_semaphore, #tpu.memory_space<semaphore_mem>> -> memref<1x!tpu.dma_semaphore, #tpu.memory_space<semaphore_mem>>
      %48 = tpu.memref_squeeze %47 : memref<1x!tpu.dma_semaphore, #tpu.memory_space<semaphore_mem>> -> memref<!tpu.dma_semaphore, #tpu.memory_space<semaphore_mem>>
      tpu.wait_dma2 semaphore(%48 : memref<!tpu.dma_semaphore, #tpu.memory_space<semaphore_mem>>) src(%45 : memref<1x32xf32, #tpu.memory_space<any>>) dst(%46 : memref<1x32xf32, #tpu.memory_space<vmem>>)
    }
    %c8_i32_7 = arith.constant 8 : i32
    %14 = arith.muli %9, %c8_i32_7 : i32
    %15 = tpu.assume_multiple %14, 8 : i32
    %16 = arith.index_cast %15 : i32 to index
    %c0 = arith.constant 0 : index
    %17 = vector.load %arg7[%16, %c0] : memref<16x32xf32, #tpu.memory_space<vmem>>, vector<8x32xf32>
    %c0_8 = arith.constant 0 : index
    %c0_9 = arith.constant 0 : index
    %18 = vector.load %arg4[%c0_8, %c0_9] : memref<8x1xi32, #tpu.memory_space<vmem>>, vector<8x1xi32>
    %19 = tpu.iota {dimensions = array<i32: 1>} : vector<8x32xi32>
    %20 = vector.broadcast %18 : vector<8x1xi32> to vector<8x32xi32>
    %21 = arith.cmpi eq, %19, %20 : vector<8x32xi32>
    %cst = arith.constant 0.000000e+00 : f32
    %22 = vector.broadcast %cst : f32 to vector<8x32xf32>
    %23 = arith.select %21, %17, %22 : vector<8x32xi1>, vector<8x32xf32>
    %cst_10 = arith.constant dense<0.000000e+00> : vector<8xf32>
    %24 = vector.multi_reduction <add>, %23, %cst_10 [1] : vector<8x32xf32> to vector<8xf32>
    %25 = vector.shape_cast %24 : vector<8xf32> to vector<8x1xf32>
    %c1_i32_11 = arith.constant 1 : i32
    %26 = arith.muli %arg0, %c1_i32_11 : i32
    %27 = arith.addi %26, %arg1 : i32
    %c8_i32_12 = arith.constant 8 : i32
    %28 = arith.muli %27, %c8_i32_12 : i32
    %29 = tpu.iota {dimensions = array<i32: 0>} : vector<8x1xi32>
    %30 = vector.broadcast %28 : i32 to vector<8x1xi32>
    %31 = arith.addi %30, %29 : vector<8x1xi32>
    %c0_13 = arith.constant 0 : index
    %c0_14 = arith.constant 0 : index
    %32 = vector.load %arg9[%c0_13, %c0_14] : memref<8x1xf32, #tpu.memory_space<vmem>>, vector<8x1xf32>
    %c2_i32_15 = arith.constant 2 : i32
    %33 = vector.broadcast %c2_i32_15 : i32 to vector<8x1xi32>
    %34 = arith.cmpi slt, %31, %33 : vector<8x1xi32>
    %cst_16 = arith.constant 0.000000e+00 : f32
    %35 = vector.broadcast %cst_16 : f32 to vector<8x1xf32>
    %36 = arith.subf %35, %25 : vector<8x1xf32>
    %cst_17 = arith.constant 0.000000e+00 : f32
    %37 = vector.broadcast %cst_17 : f32 to vector<8x1xf32>
    %38 = arith.select %34, %36, %37 : vector<8x1xi1>, vector<8x1xf32>
    %39 = arith.addf %32, %38 : vector<8x1xf32>
    %c0_18 = arith.constant 0 : index
    %c0_19 = arith.constant 0 : index
    %40 = vector.load %arg9[%c0_18, %c0_19] : memref<8x1xf32, #tpu.memory_space<vmem>>, vector<8x1xf32>
    tpu.vector_store %arg9[%c0_18, %c0_19], %39 {strides = array<i32>} : memref<8x1xf32, #tpu.memory_space<vmem>>, vector<8x1xf32>,
    %c0_i32_20 = arith.constant 0 : i32
    %41 = arith.cmpi eq, %arg1, %c0_i32_20 : i32
    %42 = arith.extui %41 : i1 to i32
    %c0_i32_21 = arith.constant 0 : i32
    %43 = arith.cmpi ne, %42, %c0_i32_21 : i32
    scf.if %43 {
      %c0_22 = arith.constant 0 : index
      %c0_23 = arith.constant 0 : index
      %44 = vector.load %arg9[%c0_22, %c0_23] : memref<8x1xf32, #tpu.memory_space<vmem>>, vector<8x1xf32>
      %cst_24 = arith.constant dense<0.000000e+00> : vector<1xf32>
      %45 = vector.multi_reduction <add>, %44, %cst_24 [0] : vector<8x1xf32> to vector<1xf32>
      %46 = vector.shape_cast %45 : vector<1xf32> to vector<1x1xf32>
      %47 = vector.shape_cast %46 : vector<1x1xf32> to vector<1x1x1xf32>
      %c0_25 = arith.constant 0 : index
      %c0_26 = arith.constant 0 : index
      %c0_27 = arith.constant 0 : index
      %48 = vector.load %arg6[%c0_25, %c0_26, %c0_27] : memref<1x1x1xf32, #tpu.memory_space<vmem>>, vector<1x1x1xf32>
      tpu.vector_store %arg6[%c0_25, %c0_26, %c0_27], %47 {strides = array<i32>} : memref<1x1x1xf32, #tpu.memory_space<vmem>>, vector<1x1x1xf32>,
    } else {
    }
    return
  }
  func.func @transform_0(%arg0: i32, %arg1: i32, %arg2: memref<2xi32, #tpu.memory_space<smem>>, %arg3: memref<2xi32, #tpu.memory_space<smem>>) -> (i32, i32) {
    %c1_i32 = arith.constant 1 : i32
    %0 = arith.muli %arg0, %c1_i32 : i32
    %1 = arith.addi %0, %arg1 : i32
    %c0_i32 = arith.constant 0 : i32
    %c0_i32_0 = arith.constant 0 : i32
    return %1, %c0_i32 : i32, i32
  }
  func.func @transform_2(%arg0: i32, %arg1: i32, %arg2: memref<2xi32, #tpu.memory_space<smem>>, %arg3: memref<2xi32, #tpu.memory_space<smem>>) -> (i32, i32, i32) {
    %c0_i32 = arith.constant 0 : i32
    %c0_i32_0 = arith.constant 0 : i32
    %c0_i32_1 = arith.constant 0 : i32
    return %arg0, %c0_i32, %c0_i32_0 : i32, i32, i32
  }
}

</mosaic_0001>

<bundles_post_ra>
// kernel: tpu_custom_call.1
= control target key start
LH: loop header
LB: loop body
LE: loop exit
PB: predicated region body
PF: predicated region fallthrough
CT: control target
= control target key end

     0   :  { %s593_s0 = inlined_call_operand.vmem [shape: s32[2], index: 0, kind: input, shape index: {}]   ;;  %s594_s2 = inlined_call_operand.vmem [shape: s32[16,1], index: 2, kind: input, shape index: {}]   ;;  %s595_s3 = inlined_call_operand.vmem [shape: f32[16,32], index: 3, kind: input, shape index: {}]   ;;  %s596_s4 = inlined_call_operand.vmem [shape: f32[2,1,1], index: 4, kind: output, shape index: {}]   ;;  %s597_s1 = inlined_call_operand.vmem [shape: s32[2], index: 1, kind: input, shape index: {}]  }
   0x1   :  { %s9_s17 = sshll.u32 %s593_s0, 4  ;;  %s13_s20 = sshll.u32 %s597_s1, 4  ;;  %s10_s17 = int_to_ptr.vmem [resolvable:$true] %s9_s17  ;;  %s14_s20 = int_to_ptr.vmem [resolvable:$true] %s13_s20 }
   0x2   :  { %s430_s21 = scalar_lea.vmem %s10_s17, 16  ;;  %p435_p1 = scmp.lt.s32.totalorder %s10_s17, %s10_s17 }
   0x3   :  { %p431_p0 = scmp.ne.s32.totalorder %s10_s17, %s430_s21  ;;  %p436_p2 = scmp.lt.s32.totalorder %s430_s21, %s430_s21 }
   0x5   :  { %p437_p3 = por %p436_p2, %p435_p1 }
   0x7   :  { %p438_p4 = pnand %p437_p3, %p431_p0 }
   0x9   :  { %441 = shalt.err (!%p438_p4)  }
   0xa   :  { %s498_s22 = smov [#allocation6]   ;;  %s442_s23 = scalar_lea.vmem %s14_s20, 16 }
   0xb   :  { %12 = dma.vmem_to_smem %s10_s17, 16, %s498_s22, [#allocation5] }
   0xc   :  { %p443_p5 = scmp.ne.s32.totalorder %s14_s20, %s442_s23  ;;  %p447_p6 = scmp.lt.s32.totalorder %s14_s20, %s14_s20 }
   0xd   :  { %p448_p7 = scmp.lt.s32.totalorder %s442_s23, %s442_s23 }
   0xf   :  { %p449_p8 = por %p448_p7, %p447_p6 }
  0x11   :  { %p450_p9 = pnand %p449_p8, %p443_p5 }
  0x13   :  { %453 = shalt.err (!%p450_p9)  }
  0x14   :  { %s499_s0 = smov [#allocation7]  }
  0x15   :  { %16 = dma.vmem_to_smem %s14_s20, 16, %s499_s0, [#allocation5] }
  0x16   :  { %474 = dma.done.wait [#allocation5], 32 }
  0x17   :  { %475 = vsyncadd [#allocation5], 4294967264 }
  0x18   :  { %18 = sfence }
  0x19   :  { %s533_s1 = smov 0   ;;  %s535_s24 = smov 0  }
  0x1a   :  { %s537_s25 = smov 0  }
  0x1b LB: > { %s36_s26 = sadd.s32 1, %s484_s24  ;;  %p375_p10 = scmp.ge.s32.totalorder %s488_s25, 1  ;;  %s488_s25 = sphi %s537_s25, %s24_s25   ;;  %s484_s24 = sphi %s535_s24, %s599_s24   ;;  %s480_s1 = sphi %s533_s1, %s598_s1  }
  0x1c   : > { %p38_p11 = scmp.ge.s32.totalorder %s36_s26, 2  ;;  %p115_p12 = scmp.lt.s32.totalorder %s488_s25, 3 }
  0x1e   : > { %s601_s26 = smov (%p38_p11, %s36_s26), 0  ;;  %p116_p13 = pnand %p375_p10, %p115_p12 }
  0x1f   : > { %p134_p0 = scmp.lt.s32.totalorder (!%p116_p13), %s480_s1, 1  ;;  %vm158_vm0 = vcmask (!%p116_p13), 7168   ;;  %s377_s27 = sshll.u32 (!%p116_p13), %s480_s1, 3  ;;  %v500_v0 = vmov (!%p116_p13), 0.0  }
  0x20   : > { %119 = sbr.rel (%p116_p13) target bundleno = 379 (0x17b), region = 24  ;;  %159 = vst.msk [vmem:[#allocation4] sm:$0xff] (!%p116_p13), %vm158_vm0, %v500_v0  ;;  %s490_s10 = smov (!%p116_p13), 0  }
  0x27   : > { %s557_s28 = scalar_select %p134_p0, %s480_s1, 1 }
  0x29   : > { %s376_s29 = sshll.u32 %s557_s28, 3  ;;  %s141_s6 = scalar_lea.vmem %s596_s4, %s557_s28 }
  0x2a   : > { %s567_s9 = scalar_lea.vmem %s594_s2, %s376_s29 }
  0x2b LB: >> { %s167_s11 = sadd.s32 %s492_s10, %s377_s27  ;;  %s180_s20 = scalar_lea.vmem [#allocation2], %s492_s10  ;;  %s492_s10 = sphi %s490_s10, %s166_s10  }
  0x2c   : >> { %p168_p1 = scmp.lt.s32.totalorder %s167_s11, 1 }
  0x2e   : >> { %s603_s11 = smov (!%p168_p1, %s167_s11), 1 }
  0x2f   : >> { %s170_s12 = sld [smem:[#allocation6 + %s603_s11]]  ;;  %s379_s15 = sshll.u32 %s603_s11, 3 }
  0x35   : >> { %p171_p2 = scmp.lt.s32.totalorder %s170_s12, 8 }
  0x37   : >> { %s605_s12 = smov (!%p171_p2, %s170_s12), 8 }
  0x38   : >> { %s378_s13 = sadd.s32 4294967295, %s605_s12  ;;  %s175_s14 = sadd.s32 7, %s605_s12 }
  0x39   : >> { %p174_p3 = scmp.lt.s32.totalorder %s378_s13, 0 }
  0x3b   : >> { %s607_s14 = smov (!%p174_p3, %s175_s14), %s378_s13 }
  0x3c   : >> { %s178_s16 = sadd.s32 %s379_s15, %s607_s14 }
  0x3d   : >> { %s179_s19 = scalar_lea.vmem %s595_s3, %s178_s16 }
  0x3e   : >> { %v198_v1 = vld [vmem:[%s179_s19] sm:$0x1] }
  0x3f   : >> { %199 = vst [vmem:[%s180_s20] sm:$0x1] %v198_v1 }
  0x40   : >> { %224 = vsyncadd [#allocation3], 16  ;;  %s166_s10 = sadd.s32 1, %s492_s10  }
  0x41   : >> { %p163_p4 = scmp.ge.s32.totalorder %s166_s10, 8  }
  0x42   : > { %s494_s21 = smov (%p163_p4), 0  }
  0x43   : > { %165 = sbr.rel (!%p163_p4) target bundleno = 43 (0x2b), region = 121 }
  0x4a LB: >> { %476 = dma.done.wait [#allocation3], 16  ;;  %s496_s21 = sphi %s494_s21, %s230_s21  }
  0x4b   : >> { %477 = vsyncadd [#allocation3], 4294967280  ;;  %s230_s21 = sadd.s32 1, %s496_s21  }
  0x4c   : >> { %p227_p5 = scmp.ge.s32.totalorder %s230_s21, 8  }
  0x4d   : > { %v238_v2 = vld [vmem:[%s567_s9] sm:$0xff] (%p227_p5)  ;;  %v501_v3 = vmov (%p227_p5), 0   ;;  %v239_v4 = vlaneseq (%p227_p5)  ;;  %vm246_vm1 = vcmask (%p227_p5), 261120   ;;  %v254_v11 = vstv (%p227_p5), %s377_s27  ;;  %v256_v14 = vld [vmem:[#allocation4] sm:$0xff] (%p227_p5) }
  0x4e   : > { %229 = sbr.rel (!%p227_p5) target bundleno = 74 (0x4a), region = 132  ;;  %429 = vset.pattern.permute.xlu0 (%p227_p5), %v501_v3  ;;  %v237_v6 = vld [vmem:[#allocation2] sm:$0xff] (%p227_p5)  ;;  %vm274_vm4 = vcmask (%p227_p5), 0  }
  0x4f   : > { %242 = vperm.xlu0 (%p227_p5), %429, %v238_v2   ;;  %v240_v5 = vand.u32 (%p227_p5), 127, %v239_v4  ;;  %v253_v10 = vshrl.u32 (%p227_p5), %v239_v4, 7 }
  0x51   : > { %v255_v12 = vadd.s32 (%p227_p5), %v254_v11, %v253_v10 }
  0x53   : > { %vm257_vm3 = vcmp.lt.s32.totalorder (%p227_p5), %v255_v12, 2 }
  0xce   : > { %v243_v7 = vpop.permute.xlu0 %242 }
  0xcf   : > { %vm244_vm2 = vcmp.eq.s32.totalorder %v240_v5, %v243_v7 }
  0xd0   : > { %v245_v8 = vsel %vm244_vm2, %v237_v6, 0.0 }
  0xd1   : > { %v247_v9 = vsel %vm246_vm1, %v245_v8, 0.0 }
  0xd2   : > { %248 = vadd.xlane.f32.xlu0 %v247_v9 }
 0x15f   : > { %v249_v13 = vpop.xlane.xlu0 %248 }
 0x160   : > { %v258_v15 = vsub.f32 0.0, %v249_v13 }
 0x162   : > { %v259_v16 = vsel %vm257_vm3, %v258_v15, 0.0 }
 0x163   : > { %v260_v17 = vadd.f32 %v259_v16, %v256_v14 }
 0x165   : > { %262 = vst.msk [vmem:[#allocation4] sm:$0xff] %vm158_vm0, %v260_v17 }
 0x16c   : > { %v266_v18 = vld [vmem:[#allocation4] sm:$0xff] }
 0x16d   : > { %v267_v19 = vsel %vm158_vm0, %v266_v18, 0.0 }
 0x16e   : > { %v268_v20 = vrot.slane %v267_v19, 4 }
 0x170   : > { %v269_v21 = vadd.f32 %v268_v20, %v267_v19 }
 0x172   : > { %v270_v22 = vrot.slane %v269_v21, 2 }
 0x174   : > { %v271_v23 = vadd.f32 %v270_v22, %v269_v21 }
 0x176   : > { %v272_v24 = vrot.slane %v271_v23, 1 }
 0x178   : > { %v273_v25 = vadd.f32 %v272_v24, %v271_v23 }
 0x17a   : > { %275 = vst.msk [vmem:[%s141_s6] sm:$0x1] %vm274_vm4, %v273_v25 }
 0x17b PF: > { %s24_s25 = sadd.s32 1, %s488_s25   ;;  %s598_s1 = smov %s484_s24 }
 0x17c   : > { %p21_p6 = scmp.ge.s32.totalorder %s24_s25, 4   ;;  %s599_s24 = smov %s601_s26 }
 0x17e   :  { %23 = sbr.rel (!%p21_p6) target bundleno = 27 (0x1b), region = 143 }
 0x185   :  { %293 = vsyncmov [#allocation3] }
 0x188   :  { %s294_s0 = vpop.sfrf %293 }
 0x189   :  { %p383_p7 = scmp.ne.s32.totalorder %s294_s0, 0 }
 0x18b   :  { %298 = shalt.err (%p383_p7)  }
 0x18c   :  { %300 = vsyncmov [#allocation3 + $0x1] }
 0x18f   :  { %s301_s27 = vpop.sfrf %300 }
 0x190   :  { %p384_p8 = scmp.ne.s32.totalorder %s301_s27, 0 }
 0x192   :  { %305 = shalt.err (%p384_p8)  }

</bundles_post_ra>
